<compile_context>
chip_gen: v6e
topology: v6e:2x2x1
jax: 0.10.0
libtpu: 0.0.40
codegen_flags: <defaults>
</compile_context>

<pallas_src>
import math

import jax
import jax.numpy as jnp
from jax.experimental import pallas as pl
from jax.experimental.pallas import tpu as pltpu


# ---------------------------------------------------------------------------
# Helpers
# ---------------------------------------------------------------------------
def _round_up(x: int, m: int) -> int:
    return ((x + m - 1) // m) * m


def _pick_tile_b(batch: int) -> int:
    """Batch tile: one tile for tiny batches, otherwise split into >= 2
    multiple-of-8 tiles so both v7x TensorCores get work.  Capped so the
    per-tile VMEM footprint stays trivially small."""
    if batch <= 8:
        return batch
    half = -(-batch // 2)               # cdiv(batch, 2)
    return min(_round_up(half, 8), 1024)


# ---------------------------------------------------------------------------
# Kernel
# ---------------------------------------------------------------------------
def _make_lstm_model_kernel(num_layers: int, hp: int, has_state: bool):
    """Fused (Linear+ReLU)*L -> single LSTM-cell-step kernel.

    All feature dims are pre-padded to `hp` (a multiple of 128) in the
    wrapper, so every gate slice below is lane-aligned and every store is an
    unmasked, lane-dense vst.
    """

    def kernel(*refs):
        # inputs : x, (W_l, b_l) * L, W_gates, b_gates, [h0, c0]
        # outputs: h_n, c_n   (both [tile_b, hp])
        n_in = 1 + 2 * num_layers + 2 + (2 if has_state else 0)
        in_refs = refs[:n_in]
        hn_ref, cn_ref = refs[n_in], refs[n_in + 1]

        idx = 0
        h = in_refs[idx][...]
        idx += 1

        # Hidden Linear + ReLU stack (statically unrolled).  MXU accumulates
        # in f32; activations are kept in the parameter dtype for the next
        # MXU pass (no-op for f32 params, native bf16 path otherwise).
        for _ in range(num_layers):
            w = in_refs[idx][...]
            b = in_refs[idx + 1][...]
            idx += 2
            h = jnp.maximum(
                jnp.dot(h, w, preferred_element_type=jnp.float32)
                + b.astype(jnp.float32), 0.0).astype(w.dtype)

        w_g = in_refs[idx][...]                            # (hp | 2*hp, 4*hp)
        b_g = in_refs[idx + 1][...].astype(jnp.float32)    # (1, 4*hp)
        idx += 2

        if has_state:
            h0 = in_refs[idx][...]                         # (tile_b, hp)
            c0 = in_refs[idx + 1][...].astype(jnp.float32)
            # Single fused gate GEMM: [h | h0] @ [W_ih; W_hh], K = 2*hp.
            hh = jnp.concatenate([h, h0.astype(h.dtype)], axis=-1)
            gates = jnp.dot(hh, w_g, preferred_element_type=jnp.float32) + b_g
        else:
            # h0 == c0 == 0: the W_hh GEMM contributes nothing -> skipped.
            gates = jnp.dot(h, w_g, preferred_element_type=jnp.float32) + b_g

        # PyTorch gate order i, f, g, o; each gate owns one hp-wide lane block.
        i_g = jax.nn.sigmoid(gates[:, 0 * hp:1 * hp])
        g_g = jnp.tanh(gates[:, 2 * hp:3 * hp])
        o_g = jax.nn.sigmoid(gates[:, 3 * hp:4 * hp])

        if has_state:
            f_g = jax.nn.sigmoid(gates[:, 1 * hp:2 * hp])
            c_new = f_g * c0 + i_g * g_g
        else:
            c_new = i_g * g_g
        h_new = o_g * jnp.tanh(c_new)

        hn_ref[...] = h_new.astype(hn_ref.dtype)
        cn_ref[...] = c_new.astype(cn_ref.dtype)

    return kernel


# ---------------------------------------------------------------------------
# Module-equivalent wrapper
# ---------------------------------------------------------------------------
class LstmModel:
    def __init__(self, in_size, device=None, hidden_size=40, num_layers=1,
                 dtype=jnp.float32, key=None):
        del device  # JAX manages placement
        if key is None:
            key = jax.random.PRNGKey(0)
        self.in_size = in_size
        self.hidden_size = hidden_size
        self.num_layers = num_layers
        self.dtype = dtype

        H = hidden_size
        Hp = _round_up(H, 128)      # lane-dense padded hidden width
        self.hp = Hp

        keys = jax.random.split(key, 2 * num_layers + 4)
        k = 0

        # Hidden Linear layers, pre-transposed to (fan_in, H) and zero-padded
        # to Hp output columns so x @ W is lane-dense.  Unpadded f32 copies
        # are kept for the pure-JAX reference.
        self.layers = []
        self._ref_layers = []
        fan_in = in_size
        for li in range(num_layers):
            bound = 1.0 / math.sqrt(fan_in)
            w = jax.random.uniform(keys[k], (fan_in, H), jnp.float32,
                                   -bound, bound)
            b = jax.random.uniform(keys[k + 1], (1, H), jnp.float32,
                                   -bound, bound)
            k += 2
            rows = in_size if li == 0 else Hp
            wp = jnp.zeros((rows, Hp), jnp.float32).at[:fan_in, :H].set(w)
            bp = jnp.zeros((1, Hp), jnp.float32).at[:, :H].set(b)
            self.layers.append((wp.astype(dtype), bp.astype(dtype)))
            self._ref_layers.append((w, b))
            fan_in = H

        # LSTM weights, pre-transposed to (H, 4H); gate order i, f, g, o.
        # Padded so every gate occupies its own Hp-wide lane block.
        bound = 1.0 / math.sqrt(H)
        w_ih = jax.random.uniform(keys[k], (H, 4 * H), jnp.float32,
                                  -bound, bound)
        w_hh = jax.random.uniform(keys[k + 1], (H, 4 * H), jnp.float32,
                                  -bound, bound)
        b_ih = jax.random.uniform(keys[k + 2], (1, 4 * H), jnp.float32,
                                  -bound, bound)
        b_hh = jax.random.uniform(keys[k + 3], (1, 4 * H), jnp.float32,
                                  -bound, bound)
        b_sum = b_ih + b_hh                 # b_ih + b_hh folded once

        w_ih_p = jnp.zeros((Hp, 4 * Hp), jnp.float32)
        w_hh_p = jnp.zeros((Hp, 4 * Hp), jnp.float32)
        b_p = jnp.zeros((1, 4 * Hp), jnp.float32)
        for g in range(4):
            w_ih_p = w_ih_p.at[:H, g * Hp:g * Hp + H].set(
                w_ih[:, g * H:(g + 1) * H])
            w_hh_p = w_hh_p.at[:H, g * Hp:g * Hp + H].set(
                w_hh[:, g * H:(g + 1) * H])
            b_p = b_p.at[:, g * Hp:g * Hp + H].set(b_sum[:, g * H:(g + 1) * H])

        self.w_ih_t = w_ih_p.astype(dtype)                 # zero-state path
        self.w_gates = jnp.concatenate([w_ih_p, w_hh_p],
                                       axis=0).astype(dtype)  # (2Hp, 4Hp)
        self.b_gates = b_p.astype(dtype)

        self._ref_w_ih = w_ih
        self._ref_w_hh = w_hh
        self._ref_b = b_sum

    def __call__(self, x, h_0=None):
        """x: [B, in_size] -> (output [B,1,H], (h_n [1,B,H], c_n [1,B,H]))"""
        B, in_size = x.shape
        assert in_size == self.in_size
        H, Hp = self.hidden_size, self.hp
        has_state = h_0 is not None

        tile_b = _pick_tile_b(B)
        grid = (pl.cdiv(B, tile_b),)

        def full_spec(arr):        # grid-invariant 2-D weight / bias
            return pl.BlockSpec(arr.shape, lambda i: (0, 0))

        def batch_spec(last):      # batch-tiled operands / outputs
            return pl.BlockSpec((tile_b, last), lambda i: (i, 0))

        inputs = [x]
        in_specs = [batch_spec(in_size)]
        for (w, b) in self.layers:
            inputs += [w, b]
            in_specs += [full_spec(w), full_spec(b)]

        if has_state:
            h0 = jnp.zeros((B, Hp), x.dtype).at[:, :H].set(
                jnp.reshape(h_0[0], (B, H)).astype(x.dtype))
            c0 = jnp.zeros((B, Hp), x.dtype).at[:, :H].set(
                jnp.reshape(h_0[1], (B, H)).astype(x.dtype))
            inputs += [self.w_gates, self.b_gates, h0, c0]
            in_specs += [full_spec(self.w_gates), full_spec(self.b_gates),
                         batch_spec(Hp), batch_spec(Hp)]
        else:
            # Zero-state fast path: no h0/c0 streams, no W_hh GEMM.
            inputs += [self.w_ih_t, self.b_gates]
            in_specs += [full_spec(self.w_ih_t), full_spec(self.b_gates)]

        out_specs = [batch_spec(Hp), batch_spec(Hp)]
        out_shapes = (jax.ShapeDtypeStruct((B, Hp), x.dtype),
                      jax.ShapeDtypeStruct((B, Hp), x.dtype))

        kernel = _make_lstm_model_kernel(self.num_layers, Hp, has_state)
        h_n, c_n = pl.pallas_call(
            kernel,
            out_shape=out_shapes,
            grid_spec=pltpu.PrefetchScalarGridSpec(
                num_scalar_prefetch=0,
                grid=grid,
                in_specs=in_specs,
                out_specs=out_specs,
            ),
            compiler_params=pltpu.CompilerParams(
                # batch tiles are independent -> shardable across both TCs
                dimension_semantics=("parallel",),
            ),
        )(*inputs)

        # Slice the lane padding off outside the kernel; reshape once to both
        # PyTorch layouts (output for the single step == h_n).
        h_n = h_n[:, :H]
        c_n = c_n[:, :H]
        output = h_n.reshape(B, 1, H)            # batch_first, seq_len == 1
        return output, (h_n.reshape(1, B, H), c_n.reshape(1, B, H))


# ---------------------------------------------------------------------------
# Pure-JAX reference (unpadded math) for correctness checking
# ---------------------------------------------------------------------------
def _reference_forward(model, x, h_0=None):
    B = x.shape[0]
    H = model.hidden_size
    h = x.astype(jnp.float32)
    for (w, b) in model._ref_layers:
        h = jnp.maximum(h @ w + b, 0.0)
    if h_0 is None:
        h0 = jnp.zeros((B, H), jnp.float32)
        c0 = jnp.zeros((B, H), jnp.float32)
    else:
        h0 = jnp.reshape(h_0[0], (B, H)).astype(jnp.float32)
        c0 = jnp.reshape(h_0[1], (B, H)).astype(jnp.float32)
    gates = h @ model._ref_w_ih + h0 @ model._ref_w_hh + model._ref_b
    i_g = jax.nn.sigmoid(gates[:, 0:H])
    f_g = jax.nn.sigmoid(gates[:, H:2 * H])
    g_g = jnp.tanh(gates[:, 2 * H:3 * H])
    o_g = jax.nn.sigmoid(gates[:, 3 * H:4 * H])
    c_n = f_g * c0 + i_g * g_g
    h_n = o_g * jnp.tanh(c_n)
    return h_n.reshape(B, 1, H), (h_n.reshape(1, B, H), c_n.reshape(1, B, H))


# ---------------------------------------------------------------------------
# Demo / correctness check
# ---------------------------------------------------------------------------
if __name__ == "__main__":
    in_size, hidden = 32, 40   # hidden_size=40 is the module default

    key = jax.random.PRNGKey(0)
    k_x, k_h, k_c, k_params, k_x2 = jax.random.split(key, 5)
    model = LstmModel(in_size, device=None, hidden_size=hidden, num_layers=1,
                      key=k_params)

    # --- small batch, zero initial state (single-tile grid) ----------------
    batch = 8
    x = jax.random.normal(k_x, (batch, in_size), dtype=jnp.float32)
    out, (h_n, c_n) = model(x)
    out = jax.block_until_ready(out)
    ref_out, (ref_h, ref_c) = _reference_forward(model, x)
    assert out.shape == (batch, 1, hidden)
    assert h_n.shape == (1, batch, hidden) and c_n.shape == (1, batch, hidden)
    assert jnp.allclose(out, ref_out, atol=1e-5, rtol=1e-5)
    assert jnp.allclose(h_n, ref_h, atol=1e-5, rtol=1e-5)
    assert jnp.allclose(c_n, ref_c, atol=1e-5, rtol=1e-5)

    # --- explicit initial state path (fused [h|h0] gate GEMM) --------------
    h0 = jax.random.normal(k_h, (1, batch, hidden), dtype=jnp.float32)
    c0 = jax.random.normal(k_c, (1, batch, hidden), dtype=jnp.float32)
    out2, (h_n2, c_n2) = model(x, (h0, c0))
    out2 = jax.block_until_ready(out2)
    ref_out2, (ref_h2, ref_c2) = _reference_forward(model, x, (h0, c0))
    assert jnp.allclose(out2, ref_out2, atol=1e-5, rtol=1e-5)
    assert jnp.allclose(h_n2, ref_h2, atol=1e-5, rtol=1e-5)
    assert jnp.allclose(c_n2, ref_c2, atol=1e-5, rtol=1e-5)

    # --- larger batch: exercises the >=2-tile grid + partial last tile -----
    batch3 = 20
    x3 = jax.random.normal(k_x2, (batch3, in_size), dtype=jnp.float32)
    out3, (h_n3, c_n3) = model(x3)
    out3 = jax.block_until_ready(out3)
    ref_out3, (ref_h3, ref_c3) = _reference_forward(model, x3)
    assert jnp.allclose(out3, ref_out3, atol=1e-5, rtol=1e-5)
    assert jnp.allclose(h_n3, ref_h3, atol=1e-5, rtol=1e-5)
    assert jnp.allclose(c_n3, ref_c3, atol=1e-5, rtol=1e-5)

    print("KERNEL_OK")
</pallas_src>

<mosaic_0001>
module attributes {stable_mosaic.version = 11 : i64} {
  func.func @kernel(%arg0: i32, %arg1: memref<8x32xf32, #tpu.memory_space<vmem>>, %arg2: memref<32x128xf32, #tpu.memory_space<vmem>>, %arg3: memref<1x128xf32, #tpu.memory_space<vmem>>, %arg4: memref<128x512xf32, #tpu.memory_space<vmem>>, %arg5: memref<1x512xf32, #tpu.memory_space<vmem>>, %arg6: memref<8x128xf32, #tpu.memory_space<vmem>>, %arg7: memref<8x128xf32, #tpu.memory_space<vmem>>) attributes {dimension_semantics = [#tpu.dimension_semantics<parallel>], iteration_bounds = array<i64: 1>, scalar_prefetch = 0 : i64, scratch_operands = 0 : i64, tpu.core_type = #tpu.core_type<tc>, window_params = [{transform_indices = @transform_0, window_bounds = array<i64: 8, 32>}, {pipeline_mode = #tpu.pipeline_mode<synchronous>, transform_indices = @transform_1, window_bounds = array<i64: 32, 128>}, {pipeline_mode = #tpu.pipeline_mode<synchronous>, transform_indices = @transform_2, window_bounds = array<i64: 1, 128>}, {pipeline_mode = #tpu.pipeline_mode<synchronous>, transform_indices = @transform_3, window_bounds = array<i64: 128, 512>}, {pipeline_mode = #tpu.pipeline_mode<synchronous>, transform_indices = @transform_4, window_bounds = array<i64: 1, 512>}, {transform_indices = @transform_5, window_bounds = array<i64: 8, 128>}, {transform_indices = @transform_6, window_bounds = array<i64: 8, 128>}]} {
    %c0 = arith.constant 0 : index
    %c0_0 = arith.constant 0 : index
    %0 = vector.load %arg1[%c0, %c0_0] : memref<8x32xf32, #tpu.memory_space<vmem>>, vector<8x32xf32>
    %c0_1 = arith.constant 0 : index
    %c0_2 = arith.constant 0 : index
    %1 = vector.load %arg2[%c0_1, %c0_2] : memref<32x128xf32, #tpu.memory_space<vmem>>, vector<32x128xf32>
    %c0_3 = arith.constant 0 : index
    %c0_4 = arith.constant 0 : index
    %2 = vector.load %arg3[%c0_3, %c0_4] : memref<1x128xf32, #tpu.memory_space<vmem>>, vector<1x128xf32>
    %cst = arith.constant dense<0.000000e+00> : vector<8x128xf32>
    %3 = tpu.matmul %0, %1, %cst {dimension_numbers = #tpu.dot_dimension_numbers<[1], [0], [0], [1], [0, 0, 1, 1], [], []>} : vector<8x32xf32>, vector<32x128xf32>, vector<8x128xf32> -> vector<8x128xf32>
    %4 = vector.broadcast %2 : vector<1x128xf32> to vector<8x128xf32>
    %5 = arith.addf %3, %4 : vector<8x128xf32>
    %cst_5 = arith.constant 0.000000e+00 : f32
    %6 = vector.broadcast %cst_5 : f32 to vector<8x128xf32>
    %7 = arith.maximumf %5, %6 : vector<8x128xf32>
    %c0_6 = arith.constant 0 : index
    %c0_7 = arith.constant 0 : index
    %8 = vector.load %arg4[%c0_6, %c0_7] : memref<128x512xf32, #tpu.memory_space<vmem>>, vector<128x512xf32>
    %c0_8 = arith.constant 0 : index
    %c0_9 = arith.constant 0 : index
    %9 = vector.load %arg5[%c0_8, %c0_9] : memref<1x512xf32, #tpu.memory_space<vmem>>, vector<1x512xf32>
    %cst_10 = arith.constant dense<0.000000e+00> : vector<8x512xf32>
    %10 = tpu.matmul %7, %8, %cst_10 {dimension_numbers = #tpu.dot_dimension_numbers<[1], [0], [0], [1], [0, 0, 1, 1], [], []>} : vector<8x128xf32>, vector<128x512xf32>, vector<8x512xf32> -> vector<8x512xf32>
    %11 = vector.broadcast %9 : vector<1x512xf32> to vector<8x512xf32>
    %12 = arith.addf %10, %11 : vector<8x512xf32>
    %13 = vector.extract_strided_slice %12 {offsets = [0, 0], sizes = [8, 128], strides = [1, 1]} : vector<8x512xf32> to vector<8x128xf32>
    %14 = arith.negf %13 : vector<8x128xf32>
    %15 = math.exp %14 : vector<8x128xf32>
    %cst_11 = arith.constant 1.000000e+00 : f32
    %16 = vector.broadcast %cst_11 : f32 to vector<8x128xf32>
    %17 = arith.addf %16, %15 : vector<8x128xf32>
    %18 = arith.divf %16, %17 : vector<8x128xf32>
    %19 = vector.extract_strided_slice %12 {offsets = [0, 256], sizes = [8, 128], strides = [1, 1]} : vector<8x512xf32> to vector<8x128xf32>
    %20 = math.tanh %19 : vector<8x128xf32>
    %21 = vector.extract_strided_slice %12 {offsets = [0, 384], sizes = [8, 128], strides = [1, 1]} : vector<8x512xf32> to vector<8x128xf32>
    %22 = arith.negf %21 : vector<8x128xf32>
    %23 = math.exp %22 : vector<8x128xf32>
    %cst_12 = arith.constant 1.000000e+00 : f32
    %24 = vector.broadcast %cst_12 : f32 to vector<8x128xf32>
    %25 = arith.addf %24, %23 : vector<8x128xf32>
    %26 = arith.divf %24, %25 : vector<8x128xf32>
    %27 = arith.mulf %18, %20 : vector<8x128xf32>
    %28 = math.tanh %27 : vector<8x128xf32>
    %29 = arith.mulf %26, %28 : vector<8x128xf32>
    %c0_13 = arith.constant 0 : index
    %c0_14 = arith.constant 0 : index
    %30 = vector.load %arg6[%c0_13, %c0_14] : memref<8x128xf32, #tpu.memory_space<vmem>>, vector<8x128xf32>
    tpu.vector_store %arg6[%c0_13, %c0_14], %29 {strides = array<i32>} : memref<8x128xf32, #tpu.memory_space<vmem>>, vector<8x128xf32>,
    %c0_15 = arith.constant 0 : index
    %c0_16 = arith.constant 0 : index
    %31 = vector.load %arg7[%c0_15, %c0_16] : memref<8x128xf32, #tpu.memory_space<vmem>>, vector<8x128xf32>
    tpu.vector_store %arg7[%c0_15, %c0_16], %27 {strides = array<i32>} : memref<8x128xf32, #tpu.memory_space<vmem>>, vector<8x128xf32>,
    return
  }
  func.func @transform_0(%arg0: i32) -> (i32, i32) {
    %c0_i32 = arith.constant 0 : i32
    %c0_i32_0 = arith.constant 0 : i32
    return %arg0, %c0_i32 : i32, i32
  }
  func.func @transform_1(%arg0: i32) -> (i32, i32) {
    %c0_i32 = arith.constant 0 : i32
    %c0_i32_0 = arith.constant 0 : i32
    %c0_i32_1 = arith.constant 0 : i32
    return %c0_i32, %c0_i32_0 : i32, i32
  }
  func.func @transform_2(%arg0: i32) -> (i32, i32) {
    %c0_i32 = arith.constant 0 : i32
    %c0_i32_0 = arith.constant 0 : i32
    %c0_i32_1 = arith.constant 0 : i32
    return %c0_i32, %c0_i32_0 : i32, i32
  }
  func.func @transform_3(%arg0: i32) -> (i32, i32) {
    %c0_i32 = arith.constant 0 : i32
    %c0_i32_0 = arith.constant 0 : i32
    %c0_i32_1 = arith.constant 0 : i32
    return %c0_i32, %c0_i32_0 : i32, i32
  }
  func.func @transform_4(%arg0: i32) -> (i32, i32) {
    %c0_i32 = arith.constant 0 : i32
    %c0_i32_0 = arith.constant 0 : i32
    %c0_i32_1 = arith.constant 0 : i32
    return %c0_i32, %c0_i32_0 : i32, i32
  }
  func.func @transform_5(%arg0: i32) -> (i32, i32) {
    %c0_i32 = arith.constant 0 : i32
    %c0_i32_0 = arith.constant 0 : i32
    return %arg0, %c0_i32 : i32, i32
  }
  func.func @transform_6(%arg0: i32) -> (i32, i32) {
    %c0_i32 = arith.constant 0 : i32
    %c0_i32_0 = arith.constant 0 : i32
    return %arg0, %c0_i32 : i32, i32
  }
}

</mosaic_0001>

<bundles_post_ra>
// kernel: tpu_custom_call.1
= control target key start
LH: loop header
LB: loop body
LE: loop exit
PB: predicated region body
PF: predicated region fallthrough
CT: control target
= control target key end

     0   :  { %12 = vsyncpa [#allocation3], 0  ;;  %s645_s0 = inlined_call_operand.hbm [shape: f32[8,32], index: 0, kind: input, shape index: {}]   ;;  %s646_s1 = inlined_call_operand.hbm [shape: f32[32,128], index: 1, kind: input, shape index: {}]   ;;  %s647_s2 = inlined_call_operand.vmem [shape: f32[1,128], index: 2, kind: input, shape index: {}]   ;;  %s648_s3 = inlined_call_operand.hbm [shape: f32[128,512], index: 3, kind: input, shape index: {}]   ;;  %s649_s4 = inlined_call_operand.vmem [shape: f32[1,512], index: 4, kind: input, shape index: {}]   ;;  %s650_s5 = inlined_call_operand.hbm [shape: f32[8,128], index: 5, kind: output, shape index: {0}]   ;;  %s651_s6 = inlined_call_operand.hbm [shape: f32[8,128], index: 6, kind: output, shape index: {1}]  }
   0x1   :  { %13 = vsyncpa [#allocation6], 0 }
   0x2   :  { %14 = vsyncpa [#allocation4], 0 }
   0x3   :  { %15 = vsyncpa [#allocation10], 0  ;;  %s571_s21 = smov [#allocation5]  }
   0x4   :  { %s31_s22 = sshll.u32 %s571_s21, 4  ;;  %s32_s22 = int_to_ptr.vmem [resolvable:$true] %s31_s22 }
   0x5   :  { %s471_s23 = scalar_lea.vmem %s32_s22, 512  ;;  %p476_p1 = scmp.lt.s32.totalorder %s32_s22, %s32_s22 }
   0x6   :  { %p472_p0 = scmp.ne.s32.totalorder %s32_s22, %s471_s23  ;;  %p477_p2 = scmp.lt.s32.totalorder %s471_s23, %s471_s23 }
   0x8   :  { %p478_p3 = por %p477_p2, %p476_p1 }
   0xa   :  { %p479_p4 = pnand %p478_p3, %p472_p0 }
   0xc   :  { %482 = shalt.err (!%p479_p4)
}
   0xd   :  { %s572_s24 = smov 128   ;;  %s573_s25 = smov 8  }
   0xe   :  { %37 = dma.hbm_to_vmem [thread:$0]  %s646_s1, 512, %s32_s22, [#allocation6], %s572_s24, %s572_s24, %s573_s25  }
   0xf   :  { %s574_s28 = smov [#allocation2]   ;;  %s575_s30 = smov [#allocation7]  }
  0x10   :  { %s22_s29 = sshll.u32 %s574_s28, 4  ;;  %s45_s7 = sshll.u32 %s575_s30, 4  ;;  %s23_s29 = int_to_ptr.vmem [resolvable:$true] %s22_s29  ;;  %s46_s7 = int_to_ptr.vmem [resolvable:$true] %s45_s7 }
  0x11   :  { %s491_s8 = scalar_lea.vmem %s23_s29, 128  ;;  %p496_p6 = scmp.lt.s32.totalorder %s23_s29, %s23_s29 }
  0x12   :  { %p492_p5 = scmp.ne.s32.totalorder %s23_s29, %s491_s8  ;;  %p497_p7 = scmp.lt.s32.totalorder %s491_s8, %s491_s8 }
  0x14   :  { %p498_p8 = por %p497_p7, %p496_p6 }
  0x16   :  { %p499_p9 = pnand %p498_p8, %p492_p5 }
  0x18   :  { %502 = shalt.err (!%p499_p9)
}
  0x19   :  { %25 = dma.hbm_to_vmem [thread:$0]  %s645_s0, 128, %s23_s29, [#allocation3]  }
  0x1a   :  { %s511_s11 = scalar_lea.vmem %s46_s7, 8192  ;;  %p516_p11 = scmp.lt.s32.totalorder %s46_s7, %s46_s7 }
  0x1b   :  { %p512_p10 = scmp.ne.s32.totalorder %s46_s7, %s511_s11  ;;  %p517_p12 = scmp.lt.s32.totalorder %s511_s11, %s511_s11 }
  0x1d   :  { %p518_p13 = por %p517_p12, %p516_p11 }
  0x1f   :  { %p519_p0 = pnand %p518_p13, %p512_p10 }
  0x21   :  { %522 = shalt.err (!%p519_p0)
}
  0x22   :  { %s576_s1 = smov 512   ;;  %s577_s12 = smov 32  }
  0x23   :  { %51 = dma.hbm_to_vmem [thread:$0]  %s648_s3, 8192, %s46_s7, [#allocation6], %s576_s1, %s576_s1, %s577_s12  }
  0x24   :  { %563 = dma.done.wait [#allocation3], 128  }
  0x25   :  { %564 = vsyncadd [#allocation3], 4294967168 }
  0x26   :  { %565 = dma.done.wait [#allocation6], 8704  }
  0x27   :  { %566 = vsyncadd [#allocation6], 4294958592  ;;  %v578_v0 = vmov 0.0   ;;  %vm579_vm0 = vmmov 0   ;;  %v67_v1 = vld [vmem:[#allocation5 + $0x18] sm:$0xff]  ;;  %v66_v2 = vld [vmem:[#allocation5 + $0x10] sm:$0xff] }
  0x28   :  { %429 = vmatprep.subr.mxu0 %v578_v0  ;;  %437 = vmatprep.mubr.msk.f32.mxu0 %vm579_vm0, %v578_v0  ;;  %v211_v3 = vld [vmem:[#allocation7 + $0x1e8] sm:$0xff]  ;;  %v210_v5 = vld [vmem:[#allocation7 + $0x1e0] sm:$0xff]  ;;  %v63_v10 = vld [vmem:[#allocation2] sm:$0xff]  ;;  %vm75_vm1 = vcmask 261120  }
  0x29   :  { %295 = vmatprep.mubr.f32.mxu1 %v578_v0  ;;  %430 = vmatpush3.msra.mxu0 %v67_v1  ;;  %v65_v4 = vld [vmem:[#allocation5 + $0x8] sm:$0xff]  ;;  %v206_v7 = vld [vmem:[#allocation7 + $0x1c0] sm:$0xff]  ;;  %v213_v11 = vld [vmem:[#allocation7 + $0x1f8] sm:$0xff] }
  0x2a   :  { %431 = vmatprep.subr.mxu0 %v578_v0  ;;  %231 = vmatprep.subr.mxu1 %v211_v3  ;;  %v207_v6 = vld [vmem:[#allocation7 + $0x1c8] sm:$0xff]  ;;  %v64_v8 = vld [vmem:[#allocation5] sm:$0xff]  ;;  %v212_v13 = vld [vmem:[#allocation7 + $0x1f0] sm:$0xff] }
  0x2b   :  { %432 = vmatpush3.msra.mxu0 %v66_v2  ;;  %232 = vmatpush1.msra.mxu1 %v210_v5  ;;  %v203_v9 = vld [vmem:[#allocation7 + $0x1a8] sm:$0xff]  ;;  %v202_v12 = vld [vmem:[#allocation7 + $0x1a0] sm:$0xff]  ;;  %v209_v15 = vld [vmem:[#allocation7 + $0x1d8] sm:$0xff] }
  0x2c   :  { %433 = vmatprep.subr.mxu0 %v578_v0  ;;  %233 = vmatprep.subr.mxu1 %v207_v6  ;;  %v199_v14 = vld [vmem:[#allocation7 + $0x188] sm:$0xff]  ;;  %v198_v16 = vld [vmem:[#allocation7 + $0x180] sm:$0xff]  ;;  %v208_v17 = vld [vmem:[#allocation7 + $0x1d0] sm:$0xff] }
  0x2d   :  { %434 = vmatpush3.msra.mxu0 %v65_v4  ;;  %234 = vmatpush1.msra.mxu1 %v206_v7  ;;  %v195_v18 = vld [vmem:[#allocation7 + $0x168] sm:$0xff]  ;;  %v205_v19 = vld [vmem:[#allocation7 + $0x1b8] sm:$0xff]  ;;  %v194_v20 = vld [vmem:[#allocation7 + $0x160] sm:$0xff] }
  0x2e   :  { %435 = vmatprep.subr.mxu0 %v578_v0  ;;  %235 = vmatprep.subr.mxu1 %v203_v9  ;;  %v204_v21 = vld [vmem:[#allocation7 + $0x1b0] sm:$0xff]  ;;  %v191_v22 = vld [vmem:[#allocation7 + $0x148] sm:$0xff]  ;;  %v201_v23 = vld [vmem:[#allocation7 + $0x198] sm:$0xff] }
  0x2f   :  { %436 = vmatpush3.msra.mxu0 %v64_v8  ;;  %236 = vmatpush1.msra.mxu1 %v202_v12  ;;  %v190_v24 = vld [vmem:[#allocation7 + $0x140] sm:$0xff]  ;;  %v200_v25 = vld [vmem:[#allocation7 + $0x190] sm:$0xff]  ;;  %v187_v26 = vld [vmem:[#allocation7 + $0x128] sm:$0xff] }
  0x30   :  { %438 = vmatmul.mubr.msk.f32.vlgmr.msra.gmra.mxu0 %vm75_vm1, %v63_v10  ;;  %301 = vmatprep.subr.mxu0 %v213_v11  ;;  %v197_v27 = vld [vmem:[#allocation7 + $0x178] sm:$0xff]  ;;  %v186_v28 = vld [vmem:[#allocation7 + $0x120] sm:$0xff]  ;;  %v196_v29 = vld [vmem:[#allocation7 + $0x170] sm:$0xff]  ;;  %v216_v11 = vlaneseq }
  0x31   :  { %302 = vmatpush1.msra.mxu0 %v212_v13  ;;  %237 = vmatprep.subr.mxu1 %v199_v14  ;;  %v183_v30 = vld [vmem:[#allocation7 + $0x108] sm:$0xff]  ;;  %v193_v31 = vld [vmem:[#allocation7 + $0x158] sm:$0xff]  ;;  %v182_v32 = vld [vmem:[#allocation7 + $0x100] sm:$0xff] }
  0x32   :  { %303 = vmatprep.subr.mxu0 %v209_v15  ;;  %238 = vmatpush1.msra.mxu1 %v198_v16  ;;  %v192_v33 = vld [vmem:[#allocation7 + $0x150] sm:$0xff]  ;;  %v179_v34 = vld [vmem:[#allocation7 + $0xe8] sm:$0xff]  ;;  %v189_v35 = vld [vmem:[#allocation7 + $0x138] sm:$0xff]  ;;  %v217_v12 = vshrl.u32 %v216_v11, 7 }
  0x33   :  { %304 = vmatpush1.msra.mxu0 %v208_v17  ;;  %239 = vmatprep.subr.mxu1 %v195_v18  ;;  %v178_v36 = vld [vmem:[#allocation7 + $0xe0] sm:$0xff]  ;;  %v188_v37 = vld [vmem:[#allocation7 + $0x130] sm:$0xff]  ;;  %v175_v38 = vld [vmem:[#allocation7 + $0xc8] sm:$0xff] }
  0x34   :  { %305 = vmatprep.subr.mxu0 %v205_v19  ;;  %240 = vmatpush1.msra.mxu1 %v194_v20  ;;  %v185_v39 = vld [vmem:[#allocation7 + $0x118] sm:$0xff]  ;;  %v174_v40 = vld [vmem:[#allocation7 + $0xc0] sm:$0xff]  ;;  %v184_v41 = vld [vmem:[#allocation7 + $0x110] sm:$0xff]  ;;  %v218_v13 = vsub.s32 0, %v217_v12  ;;  %v226_v17 = vsub.s32 3, %v217_v12 }
  0x35   :  { %306 = vmatpush1.msra.mxu0 %v204_v21  ;;  %241 = vmatprep.subr.mxu1 %v191_v22  ;;  %v171_v42 = vld [vmem:[#allocation7 + $0xa8] sm:$0xff]  ;;  %v181_v43 = vld [vmem:[#allocation7 + $0xf8] sm:$0xff]  ;;  %v170_v44 = vld [vmem:[#allocation7 + $0xa0] sm:$0xff] }
  0x36   :  { %307 = vmatprep.subr.mxu0 %v201_v23  ;;  %242 = vmatpush1.msra.mxu1 %v190_v24  ;;  %v180_v45 = vld [vmem:[#allocation7 + $0xf0] sm:$0xff]  ;;  %v167_v46 = vld [vmem:[#allocation7 + $0x88] sm:$0xff]  ;;  %v177_v47 = vld [vmem:[#allocation7 + $0xd8] sm:$0xff]  ;;  %v222_v24 = vsub.s32 2, %v217_v12 }
  0x37   :  { %308 = vmatpush1.msra.mxu0 %v200_v25  ;;  %243 = vmatprep.subr.mxu1 %v187_v26  ;;  %v166_v48 = vld [vmem:[#allocation7 + $0x80] sm:$0xff]  ;;  %v176_v49 = vld [vmem:[#allocation7 + $0xd0] sm:$0xff]  ;;  %v163_v50 = vld [vmem:[#allocation7 + $0x68] sm:$0xff] }
  0x38   :  { %309 = vmatprep.subr.mxu0 %v197_v27  ;;  %244 = vmatpush1.msra.mxu1 %v186_v28  ;;  %v173_v51 = vld [vmem:[#allocation7 + $0xb8] sm:$0xff]  ;;  %v162_v52 = vld [vmem:[#allocation7 + $0x60] sm:$0xff]  ;;  %v172_v53 = vld [vmem:[#allocation7 + $0xb0] sm:$0xff] }
  0x39   :  { %310 = vmatpush1.msra.mxu0 %v196_v29  ;;  %245 = vmatprep.subr.mxu1 %v183_v30  ;;  %v159_v54 = vld [vmem:[#allocation7 + $0x48] sm:$0xff]  ;;  %v169_v55 = vld [vmem:[#allocation7 + $0x98] sm:$0xff]  ;;  %v168_v56 = vld [vmem:[#allocation7 + $0x90] sm:$0xff] }
  0x3a   :  { %311 = vmatprep.subr.mxu0 %v193_v31  ;;  %246 = vmatpush1.msra.mxu1 %v182_v32  ;;  %v165_v57 = vld [vmem:[#allocation7 + $0x78] sm:$0xff]  ;;  %v164_v58 = vld [vmem:[#allocation7 + $0x70] sm:$0xff]  ;;  %v158_v60 = vld [vmem:[#allocation7 + $0x40] sm:$0xff] }
  0x3b   :  { %312 = vmatpush1.msra.mxu0 %v192_v33  ;;  %247 = vmatprep.subr.mxu1 %v179_v34  ;;  %v161_v59 = vld [vmem:[#allocation7 + $0x58] sm:$0xff]  ;;  %v160_v61 = vld [vmem:[#allocation7 + $0x50] sm:$0xff]  ;;  %v155_v62 = vld [vmem:[#allocation7 + $0x28] sm:$0xff] }
  0x3c   :  { %313 = vmatprep.subr.mxu0 %v189_v35  ;;  %248 = vmatpush1.msra.mxu1 %v178_v36  ;;  %v157_v63 = vld [vmem:[#allocation7 + $0x38] sm:$0xff]  ;;  %v154_v1 = vld [vmem:[#allocation7 + $0x20] sm:$0xff]  ;;  %v156_v2 = vld [vmem:[#allocation7 + $0x30] sm:$0xff] }
  0x3d   :  { %314 = vmatpush1.msra.mxu0 %v188_v37  ;;  %249 = vmatprep.subr.mxu1 %v175_v38  ;;  %v151_v3 = vld [vmem:[#allocation7 + $0x8] sm:$0xff]  ;;  %v153_v4 = vld [vmem:[#allocation7 + $0x18] sm:$0xff]  ;;  %v152_v5 = vld [vmem:[#allocation7 + $0x10] sm:$0xff] }
  0x3e   :  { %315 = vmatprep.subr.mxu0 %v185_v39  ;;  %250 = vmatpush1.msra.mxu1 %v174_v40  ;;  %v420_v6 = vld [vmem:[%s647_s2] ss:$0 sm:$0xff]  ;;  %s580_s2 = smov [#allocation9]  }
  0x3f   :  { %316 = vmatpush1.msra.mxu0 %v184_v41  ;;  %251 = vmatprep.subr.mxu1 %v171_v42  ;;  %v214_v14 = vld [vmem:[%s649_s4] sm:$0xf]  ;;  %s406_s4 = sshll.u32 %s580_s2, 4  ;;  %s407_s4 = int_to_ptr.vmem [resolvable:$true] %s406_s4 }
  0x40   :  { %317 = vmatprep.subr.mxu0 %v181_v43  ;;  %252 = vmatpush1.msra.mxu1 %v170_v44  ;;  %v219_v15 = vrot.slane %v214_v14, %v218_v13  ;;  %v227_v22 = vrot.slane %v214_v14, %v226_v17  ;;  %v223_v26 = vrot.slane %v214_v14, %v222_v24  ;;  %s523_s17 = scalar_lea.vmem %s407_s4, 128  ;;  %p528_p2 = scmp.lt.s32.totalorder %s407_s4, %s407_s4 }
  0x41   :  { %318 = vmatpush1.msra.mxu0 %v180_v45  ;;  %253 = vmatprep.subr.mxu1 %v167_v46  ;;  %p524_p1 = scmp.ne.s32.totalorder %s407_s4, %s523_s17  ;;  %p529_p3 = scmp.lt.s32.totalorder %s523_s17, %s523_s17 }
  0x42   :  { %319 = vmatprep.subr.mxu0 %v177_v47  ;;  %254 = vmatpush1.msra.mxu1 %v166_v48 }
  0x43   :  { %320 = vmatpush1.msra.mxu0 %v176_v49  ;;  %255 = vmatprep.subr.mxu1 %v163_v50  ;;  %p530_p4 = por %p529_p3, %p528_p2 }
  0x44   :  { %321 = vmatprep.subr.mxu0 %v173_v51  ;;  %256 = vmatpush1.msra.mxu1 %v162_v52 }
  0x45   :  { %322 = vmatpush1.msra.mxu0 %v172_v53  ;;  %257 = vmatprep.subr.mxu1 %v159_v54  ;;  %p531_p5 = pnand %p530_p4, %p524_p1 }
  0x46   :  { %323 = vmatprep.subr.mxu0 %v169_v55  ;;  %365 = vmatprep.mubr.f32.mxu0 %v578_v0  ;;  %v150_v0 = vld [vmem:[#allocation7] sm:$0xff] }
  0x47   :  { %324 = vmatpush1.msra.mxu0 %v168_v56  ;;  %258 = vmatpush1.msra.mxu1 %v158_v60 }
  0x48   :  { %325 = vmatprep.subr.mxu0 %v165_v57  ;;  %259 = vmatprep.subr.mxu1 %v155_v62 }
  0x49   :  { %326 = vmatpush1.msra.mxu0 %v164_v58  ;;  %260 = vmatpush1.msra.mxu1 %v154_v1 }
  0x4a   :  { %327 = vmatprep.subr.mxu0 %v161_v59  ;;  %261 = vmatprep.subr.mxu1 %v151_v3 }
  0x4b   :  { %328 = vmatpush1.msra.mxu0 %v160_v61  ;;  %262 = vmatpush1.msra.mxu1 %v150_v0 }
  0x4c   :  { %329 = vmatprep.subr.mxu0 %v157_v63 }
  0x4d   :  { %330 = vmatpush1.msra.mxu0 %v156_v2 }
  0x4e   :  { %331 = vmatprep.subr.mxu0 %v153_v4 }
  0x4f   :  { %332 = vmatpush1.msra.mxu0 %v152_v5 }
  0xf0   :  { %v145_v7 = vpop.f32.mrf.mxu0 }
  0xf1   :  { %v146_v8 = vadd.f32 %v420_v6, %v145_v7 }
  0xf2   :  { %v439_v9 = vpop.f32.mrf.mxu0 }
  0xf3   :  { %v149_v10 = vmax.f32 %v146_v8, 0.0 }
  0xf5   :  { %296 = vmatmul.mubr.f32.vlgmr.msra.gmra.mxu1 %v149_v10  ;;  %366 = vmatmul.mubr.f32.vlgmr.msra.gmra.mxu0 %v149_v10 }
 0x1b5   :  { %v297_v16 = vpop.f32.mrf.mxu1  ;;  %v367_v19 = vpop.f32.mrf.mxu0 }
 0x1b6   :  { %v298_v18 = vadd.f32 %v297_v16, %v219_v15  ;;  %v368_v28 = vadd.f32 %v367_v19, %v223_v26 }
 0x1b7   :  { %v299_v20 = vpop.f32.mrf.mxu1  ;;  %v369_v23 = vpop.f32.mrf.mxu0 }
 0x1b8   :  { %v422_v21 = vmul.f32 -1.442695, %v298_v18  ;;  %v370_v25 = vadd.f32 %v369_v23, %v227_v22 }
 0x1ba   :  { %451 = vpow2.f32 %v422_v21  ;;  %v423_v27 = vmul.f32 -1.442695, %v370_v25 }
 0x1bc   :  { %453 = vpow2.f32 %v423_v27 }
 0x1bd   :  { %455 = vtanh.f32 %v368_v28 }
 0x1c7   :  { %v452_v29 = vpop.eup %451 }
 0x1c8   :  { %v375_v30 = vadd.f32 1.0, %v452_v29 }
 0x1c9   :  { %v454_v31 = vpop.eup %453 }
 0x1ca   :  { %457 = vrcp.f32 %v375_v30  ;;  %v382_v32 = vadd.f32 1.0, %v454_v31  ;;  %v456_v33 = vpop.eup %455 }
 0x1cc   :  { %459 = vrcp.f32 %v382_v32 }
 0x1d7   :  { %v458_v34 = vpop.eup %457 }
 0x1d8   :  { %v385_v35 = vmul.f32 %v458_v34, %v456_v33 }
 0x1da   :  { %461 = vtanh.f32 %v385_v35  ;;  %389 = vst [vmem:[#allocation9] sm:$0xff] %v385_v35 }
 0x1db   :  { %534 = shalt.err (!%p531_p5)
}
 0x1dc   :  { %409 = dma.vmem_to_hbm [thread:$0]  %s407_s4, 128, %s651_s6, [#allocation10]   ;;  %v460_v36 = vpop.eup %459 }
 0x1dd   :  { %s581_s20 = smov [#allocation8]  }
 0x1de   :  { %s396_s21 = sshll.u32 %s581_s20, 4  ;;  %s397_s21 = int_to_ptr.vmem [resolvable:$true] %s396_s21 }
 0x1df   :  { %s543_s22 = scalar_lea.vmem %s397_s21, 128  ;;  %p548_p7 = scmp.lt.s32.totalorder %s397_s21, %s397_s21 }
 0x1e0   :  { %p544_p6 = scmp.ne.s32.totalorder %s397_s21, %s543_s22  ;;  %p549_p8 = scmp.lt.s32.totalorder %s543_s22, %s543_s22 }
 0x1e2   :  { %p550_p9 = por %p549_p8, %p548_p7 }
 0x1e4   :  { %p551_p10 = pnand %p550_p9, %p544_p6 }
 0x1e7   :  { %v462_v37 = vpop.eup %461 }
 0x1e8   :  { %v387_v38 = vmul.f32 %v462_v37, %v460_v36 }
 0x1ea   :  { %388 = vst [vmem:[#allocation8] sm:$0xff] %v387_v38 }
 0x1eb   :  { %554 = shalt.err (!%p551_p10)
}
 0x1ec   :  { %399 = dma.vmem_to_hbm [thread:$0]  %s397_s21, 128, %s650_s5, [#allocation4]  }
 0x1ed   :  { %567 = dma.done.wait [#allocation4], 128  }
 0x1ee   :  { %568 = vsyncadd [#allocation4], 4294967168 }
 0x1ef   :  { %569 = dma.done.wait [#allocation10], 128  }
 0x1f0   :  { %570 = vsyncadd [#allocation10], 4294967168 }
 0x1f1   :  { %416 = vsyncpa [#allocation3], 1 }
 0x1f2   :  { %417 = vsyncpa [#allocation6], 1 }
 0x1f3   :  { %418 = vsyncpa [#allocation4], 1 }
 0x1f4   :  { %419 = vsyncpa [#allocation10], 1 }

</bundles_post_ra>
